<compile_context>
chip_gen: v6e
topology: v6e:2x2x1
jax: 0.10.0
libtpu: 0.0.40
codegen_flags: <defaults>
</compile_context>

<pallas_src>
import math

import jax
import jax.numpy as jnp
from jax import lax
from jax.experimental import pallas as pl
from jax.experimental.pallas import tpu as pltpu

BLOCK_SIZE = 256   # module's `block_size`
N_EMBD = 256       # module's `n_embd`


def _relative_head_kernel(x_ref, w_ref, e_ref, o_ref):
    # x_ref: (T, C) bf16    w_ref: (C, 3H) bf16 ordered [q|k|v]
    # e_ref: (T, H) bf16    o_ref: (T, H) f32
    T = x_ref.shape[0]
    H = o_ref.shape[-1]
    cdt = x_ref.dtype                       # MXU operand dtype (bf16)

    # Fused projection: one MXU matmul (3H output lanes), f32 accumulation.
    qkv = jnp.dot(x_ref[...], w_ref[...], preferred_element_type=jnp.float32)
    q = qkv[:, 0:H]
    k = qkv[:, H:2 * H]
    v = qkv[:, 2 * H:3 * H]

    scale = H ** (-0.5)
    q_s = (q * scale).astype(cdt)           # scaled q: content scores only
    q_c = q.astype(cdt)                     # unscaled q: position scores
    k_c = k.astype(cdt)

    # Content scores: (q/sqrt(H)) @ k^T, contraction on the head dim of both
    # operands (no explicit transpose).  Scale applied to q = T*H mults.
    content = lax.dot_general(
        q_s, k_c,
        dimension_numbers=(((1,), (1,)), ((), ())),
        preferred_element_type=jnp.float32)                       # (T, T)

    # Position scores against the causal window of the relative table:
    # p[i, r] = q[i] . E[offset r - (T-1)],  r in [0, T).
    p = lax.dot_general(
        q_c, e_ref[...],
        dimension_numbers=(((1,), (1,)), ((), ())),
        preferred_element_type=jnp.float32)                       # (T, T)

    # Skew: pos[i, j] = p[i, j - i + (T-1)] for j <= i.  Single strided XLU
    # rotate: roll row i right by (i+1) (jnp.roll convention), which equals a
    # left rotate by (T-1-i) mod T.  Columns that wrap around land only at
    # j > i and are removed by the causal mask below.
    pos = pltpu.roll(p, shift=1, axis=1, stride=1, stride_axis=0)  # (T, T)

    wei = content + pos

    # Causal (tril) mask, applied AFTER the skew: keep j <= i.
    row = lax.broadcasted_iota(jnp.int32, (T, 1), 0)               # (T, 1)
    col = lax.broadcasted_iota(jnp.int32, (T, T), 1)               # (T, T)
    wei = jnp.where(col <= row, wei, -jnp.inf)

    # Softmax along the key axis (f32 VPU/EUP); EUP reciprocal, no (T,T) divide.
    m = jnp.max(wei, axis=-1, keepdims=True)
    ew = jnp.exp(wei - m)
    ssum = jnp.sum(ew, axis=-1, keepdims=True)
    att = ew * pl.reciprocal(ssum, approx=True)

    out = jnp.dot(att.astype(cdt), v.astype(cdt),
                  preferred_element_type=jnp.float32)              # (T, H)
    o_ref[...] = out.astype(o_ref.dtype)


def prepare_relative_head_params(w_key, w_query, w_value, rel_pos_embedding,
                                 seq_len, compute_dtype=jnp.bfloat16):
    """Hoisted, one-time parameter prep (do NOT redo this per forward call).

    Returns:
      w_qkv: (C, 3H) compute_dtype, columns ordered [q | k | v].
      e_win: (T, H)  compute_dtype -- rows are relative offsets -(T-1)..0,
             i.e. exactly the offsets reachable under the causal mask.
    """
    assert w_key.shape == w_query.shape == w_value.shape
    assert 1 <= seq_len <= BLOCK_SIZE
    w_qkv = jnp.concatenate([w_query.T, w_key.T, w_value.T], axis=1)
    e_win = rel_pos_embedding[BLOCK_SIZE - seq_len: BLOCK_SIZE]     # (T, H)
    return w_qkv.astype(compute_dtype), e_win.astype(compute_dtype)


def relative_head(x, w_qkv, e_win):
    """Pallas implementation of RelativeHead.forward (eval mode).

    Args:
      x: (B, T, C) float, C == N_EMBD.
      w_qkv: (C, 3H) from prepare_relative_head_params.
      e_win: (T, H)  from prepare_relative_head_params (same T as x).
    Returns:
      (B, T, H) float32.
    """
    B, T, C = x.shape
    H = w_qkv.shape[1] // 3
    assert C == N_EMBD and e_win.shape == (T, H)
    if T % 128 != 0:
        # The strided-roll skew relies on wraparound modulo T on clean lane
        # tiles; T = 128 / 256 (= block_size) are the supported shapes.
        raise ValueError("relative_head: T must be a multiple of 128")

    x = x.astype(w_qkv.dtype)   # bf16 operands for the MXU; f32 accumulate

    grid_spec = pltpu.PrefetchScalarGridSpec(
        num_scalar_prefetch=0,
        grid=(B,),
        in_specs=[
            pl.BlockSpec((None, T, C), lambda b: (b, 0, 0)),   # per-batch slice
            pl.BlockSpec((C, 3 * H), lambda b: (0, 0)),        # resident weight
            pl.BlockSpec((T, H), lambda b: (0, 0)),            # resident table
        ],
        out_specs=pl.BlockSpec((None, T, H), lambda b: (b, 0, 0)),
    )

    return pl.pallas_call(
        _relative_head_kernel,
        out_shape=jax.ShapeDtypeStruct((B, T, H), jnp.float32),
        grid_spec=grid_spec,
        compiler_params=pltpu.CompilerParams(
            dimension_semantics=("parallel",)),   # batch across v7x's 2 TCs
    )(x, w_qkv, e_win)


def relative_head_ref(x, w_key, w_query, w_value, rel_pos_embedding):
    """Pure-JAX f32 reference mirroring the PyTorch forward (eval mode)."""
    B, T, C = x.shape
    k = x @ w_key.T
    q = x @ w_query.T
    v = x @ w_value.T
    content = (q @ jnp.swapaxes(k, -2, -1)) * (k.shape[-1] ** -0.5)
    rel_idx = (jnp.arange(T)[None, :] - jnp.arange(T)[:, None]) + (BLOCK_SIZE - 1)
    rel_e = rel_pos_embedding[rel_idx]                       # (T, T, H)
    pos = jnp.einsum("bid,ijd->bij", q, rel_e)
    wei = content + pos
    mask = jnp.tril(jnp.ones((T, T), dtype=bool))
    wei = jnp.where(mask, wei, -jnp.inf)
    wei = jax.nn.softmax(wei, axis=-1)
    return wei @ v


if __name__ == "__main__":
    # C is fixed to n_embd = 256 by the module; T = 128 keeps the strided roll,
    # matmuls and stores on clean (8,128) lane tiles; B = 2 exercises the
    # parallel batch grid; H = 64 is a typical head size.
    B, T, C, H = 2, 128, N_EMBD, 64

    key = jax.random.PRNGKey(0)
    kx, kk, kq, kv, kr = jax.random.split(key, 5)

    x = jax.random.normal(kx, (B, T, C), dtype=jnp.float32)

    # Deterministic synthetic parameters (nn.Linear(256, H, bias=False) weights
    # have shape (H, 256); rel_pos_embedding is (2*block_size - 1, H), std=0.02).
    bound = 1.0 / math.sqrt(C)
    w_key = jax.random.uniform(kk, (H, C), jnp.float32, -bound, bound)
    w_query = jax.random.uniform(kq, (H, C), jnp.float32, -bound, bound)
    w_value = jax.random.uniform(kv, (H, C), jnp.float32, -bound, bound)
    rel_pos_embedding = 0.02 * jax.random.normal(
        kr, (2 * BLOCK_SIZE - 1, H), dtype=jnp.float32)

    # One-time prep (hoisted out of the per-call path).
    w_qkv, e_win = prepare_relative_head_params(
        w_key, w_query, w_value, rel_pos_embedding, T)

    out = relative_head(x, w_qkv, e_win)
    out = jax.block_until_ready(out)

    ref = relative_head_ref(x, w_key, w_query, w_value, rel_pos_embedding)
    assert out.shape == (B, T, H)
    # 3e-2 tolerance accommodates bfloat16 MXU operands (f32 accumulation) and
    # the approximate EUP reciprocal in the softmax normalization; a real bug
    # (e.g. a wrong skew) would produce O(1) errors and still be caught.
    assert jnp.allclose(out, ref, atol=3e-2, rtol=3e-2), "mismatch vs reference"

    print("KERNEL_OK")
</pallas_src>

<mosaic_0001>
module attributes {stable_mosaic.version = 11 : i64} {
  func.func @_relative_head_kernel(%arg0: i32, %arg1: memref<1x128x256xbf16, #tpu.memory_space<vmem>>, %arg2: memref<256x192xbf16, #tpu.memory_space<vmem>>, %arg3: memref<128x64xbf16, #tpu.memory_space<vmem>>, %arg4: memref<1x128x64xf32, #tpu.memory_space<vmem>>) attributes {dimension_semantics = [#tpu.dimension_semantics<parallel>], iteration_bounds = array<i64: 2>, scalar_prefetch = 0 : i64, scratch_operands = 0 : i64, tpu.core_type = #tpu.core_type<tc>, window_params = [{transform_indices = @transform_0, window_bounds = array<i64: 1, 128, 256>}, {pipeline_mode = #tpu.pipeline_mode<synchronous>, transform_indices = @transform_1, window_bounds = array<i64: 256, 192>}, {pipeline_mode = #tpu.pipeline_mode<synchronous>, transform_indices = @transform_2, window_bounds = array<i64: 128, 64>}, {transform_indices = @transform_3, window_bounds = array<i64: 1, 128, 64>}]} {
    %c0 = arith.constant 0 : index
    %c0_0 = arith.constant 0 : index
    %c0_1 = arith.constant 0 : index
    %0 = vector.load %arg1[%c0, %c0_0, %c0_1] : memref<1x128x256xbf16, #tpu.memory_space<vmem>>, vector<1x128x256xbf16>
    %1 = vector.shape_cast %0 : vector<1x128x256xbf16> to vector<128x256xbf16>
    %c0_2 = arith.constant 0 : index
    %c0_3 = arith.constant 0 : index
    %2 = vector.load %arg2[%c0_2, %c0_3] : memref<256x192xbf16, #tpu.memory_space<vmem>>, vector<256x192xbf16>
    %cst = arith.constant dense<0.000000e+00> : vector<128x192xf32>
    %3 = tpu.matmul %1, %2, %cst {dimension_numbers = #tpu.dot_dimension_numbers<[1], [0], [0], [1], [0, 0, 1, 1], [], []>} : vector<128x256xbf16>, vector<256x192xbf16>, vector<128x192xf32> -> vector<128x192xf32>
    %4 = vector.extract_strided_slice %3 {offsets = [0, 0], sizes = [128, 64], strides = [1, 1]} : vector<128x192xf32> to vector<128x64xf32>
    %5 = vector.extract_strided_slice %3 {offsets = [0, 64], sizes = [128, 64], strides = [1, 1]} : vector<128x192xf32> to vector<128x64xf32>
    %6 = vector.extract_strided_slice %3 {offsets = [0, 128], sizes = [128, 64], strides = [1, 1]} : vector<128x192xf32> to vector<128x64xf32>
    %cst_4 = arith.constant 1.250000e-01 : f32
    %7 = vector.broadcast %cst_4 : f32 to vector<128x64xf32>
    %8 = arith.mulf %4, %7 : vector<128x64xf32>
    %9 = arith.truncf %8 : vector<128x64xf32> to vector<128x64xbf16>
    %10 = arith.truncf %4 : vector<128x64xf32> to vector<128x64xbf16>
    %11 = arith.truncf %5 : vector<128x64xf32> to vector<128x64xbf16>
    %cst_5 = arith.constant dense<0.000000e+00> : vector<128x128xf32>
    %12 = tpu.matmul %9, %11, %cst_5 {dimension_numbers = #tpu.dot_dimension_numbers<[1], [1], [0], [0], [0, 0, 1, 0], [], []>} : vector<128x64xbf16>, vector<128x64xbf16>, vector<128x128xf32> -> vector<128x128xf32>
    %c0_6 = arith.constant 0 : index
    %c0_7 = arith.constant 0 : index
    %13 = vector.load %arg3[%c0_6, %c0_7] : memref<128x64xbf16, #tpu.memory_space<vmem>>, vector<128x64xbf16>
    %cst_8 = arith.constant dense<0.000000e+00> : vector<128x128xf32>
    %14 = tpu.matmul %10, %13, %cst_8 {dimension_numbers = #tpu.dot_dimension_numbers<[1], [1], [0], [0], [0, 0, 1, 0], [], []>} : vector<128x64xbf16>, vector<128x64xbf16>, vector<128x128xf32> -> vector<128x128xf32>
    %c1_i32 = arith.constant 1 : i32
    %15 = tpu.dynamic_rotate %14 by %c1_i32 dim 1 {stride = 1 : si32, stride_dimension = 0 : si32} : vector<128x128xf32>, i32 -> vector<128x128xf32>
    %16 = arith.addf %12, %15 : vector<128x128xf32>
    %17 = tpu.iota {dimensions = array<i32: 0>} : vector<128x1xi32>
    %18 = tpu.iota {dimensions = array<i32: 1>} : vector<128x128xi32>
    %19 = vector.broadcast %17 : vector<128x1xi32> to vector<128x128xi32>
    %20 = arith.cmpi sle, %18, %19 : vector<128x128xi32>
    %cst_9 = arith.constant 0xFF800000 : f32
    %21 = vector.broadcast %cst_9 : f32 to vector<128x128xf32>
    %22 = arith.select %20, %16, %21 : vector<128x128xi1>, vector<128x128xf32>
    %cst_10 = arith.constant dense<0xFF800000> : vector<128xf32>
    %23 = vector.multi_reduction <maximumf>, %22, %cst_10 [1] : vector<128x128xf32> to vector<128xf32>
    %24 = vector.shape_cast %23 : vector<128xf32> to vector<128x1xf32>
    %25 = vector.broadcast %24 : vector<128x1xf32> to vector<128x128xf32>
    %26 = arith.subf %22, %25 : vector<128x128xf32>
    %27 = math.exp %26 : vector<128x128xf32>
    %cst_11 = arith.constant dense<0.000000e+00> : vector<128xf32>
    %28 = vector.multi_reduction <add>, %27, %cst_11 [1] : vector<128x128xf32> to vector<128xf32>
    %29 = vector.shape_cast %28 : vector<128xf32> to vector<128x1xf32>
    %30 = tpu.reciprocal %29 {approx = true} : vector<128x1xf32> -> vector<128x1xf32>
    %31 = vector.broadcast %30 : vector<128x1xf32> to vector<128x128xf32>
    %32 = arith.mulf %27, %31 : vector<128x128xf32>
    %33 = arith.truncf %32 : vector<128x128xf32> to vector<128x128xbf16>
    %34 = arith.truncf %6 : vector<128x64xf32> to vector<128x64xbf16>
    %cst_12 = arith.constant dense<0.000000e+00> : vector<128x64xf32>
    %35 = tpu.matmul %33, %34, %cst_12 {dimension_numbers = #tpu.dot_dimension_numbers<[1], [0], [0], [1], [0, 0, 1, 1], [], []>} : vector<128x128xbf16>, vector<128x64xbf16>, vector<128x64xf32> -> vector<128x64xf32>
    %c0_13 = arith.constant 0 : index
    %c0_14 = arith.constant 0 : index
    %c0_15 = arith.constant 0 : index
    %36 = vector.load %arg4[%c0_13, %c0_14, %c0_15] : memref<1x128x64xf32, #tpu.memory_space<vmem>>, vector<1x128x64xf32>
    %37 = vector.shape_cast %36 : vector<1x128x64xf32> to vector<128x64xf32>
    %38 = vector.shape_cast %35 : vector<128x64xf32> to vector<1x128x64xf32>
    tpu.vector_store %arg4[%c0_13, %c0_14, %c0_15], %38 {strides = array<i32>} : memref<1x128x64xf32, #tpu.memory_space<vmem>>, vector<1x128x64xf32>,
    return
  }
  func.func @transform_0(%arg0: i32) -> (i32, i32, i32) {
    %c0_i32 = arith.constant 0 : i32
    %c0_i32_0 = arith.constant 0 : i32
    %c0_i32_1 = arith.constant 0 : i32
    return %arg0, %c0_i32, %c0_i32_0 : i32, i32, i32
  }
  func.func @transform_1(%arg0: i32) -> (i32, i32) {
    %c0_i32 = arith.constant 0 : i32
    %c0_i32_0 = arith.constant 0 : i32
    %c0_i32_1 = arith.constant 0 : i32
    return %c0_i32, %c0_i32_0 : i32, i32
  }
  func.func @transform_2(%arg0: i32) -> (i32, i32) {
    %c0_i32 = arith.constant 0 : i32
    %c0_i32_0 = arith.constant 0 : i32
    %c0_i32_1 = arith.constant 0 : i32
    return %c0_i32, %c0_i32_0 : i32, i32
  }
  func.func @transform_3(%arg0: i32) -> (i32, i32, i32) {
    %c0_i32 = arith.constant 0 : i32
    %c0_i32_0 = arith.constant 0 : i32
    %c0_i32_1 = arith.constant 0 : i32
    return %arg0, %c0_i32, %c0_i32_0 : i32, i32, i32
  }
}

</mosaic_0001>

<bundles_post_ra>
// kernel: tpu_custom_call.1
= control target key start
LH: loop header
LB: loop body
LE: loop exit
PB: predicated region body
PF: predicated region fallthrough
CT: control target
= control target key end

     0   :  { %s1878_s12 = smov 0   ;;  %s2382_s0 = inlined_call_operand.vmem [shape: bf16[2,128,256], index: 0, kind: input, shape index: {}]   ;;  %s2383_s1 = inlined_call_operand.vmem [shape: bf16[256,192], index: 1, kind: input, shape index: {}]   ;;  %s2384_s2 = inlined_call_operand.vmem [shape: bf16[128,64], index: 2, kind: input, shape index: {}]   ;;  %s2385_s3 = inlined_call_operand.vmem [shape: f32[2,128,64], index: 3, kind: output, shape index: {}]  }
   0x1 LB: > { %s1419_s13 = sadd.s32 4294967295, %s1839_s12   ;;  %p1423_p0 = scmp.ge.s32.totalorder %s1839_s12, 1  ;;  %s1839_s12 = sphi %s1878_s12, %s13_s12  }
   0x2   : > { %p137_p1 = scmp.lt.s32.totalorder %s1839_s12, 3 }
   0x4   : > { %p138_p2 = pnand %p1423_p0, %p137_p1 }
   0x5   : > { %p161_p3 = scmp.lt.s32.totalorder (!%p138_p2), %s1419_s13, 1  ;;  %s1842_s27 = smov (!%p138_p2), 257  }
   0x6   : > { %141 = sbr.rel (%p138_p2) target bundleno = 1253 (0x4e5), region = 32  ;;  %s1843_s28 = smov (!%p138_p2), 265  }
   0x7   : > { %s1844_s29 = smov (!%p138_p2), 273   ;;  %s1845_s30 = smov (!%p138_p2), 281  }
   0x8   : > { %s1846_s4 = smov (!%p138_p2), 289   ;;  %s1847_s5 = smov (!%p138_p2), 297  }
   0x9   : > { %s1848_s6 = smov (!%p138_p2), 305   ;;  %s1849_s7 = smov (!%p138_p2), 313  }
   0xa   : > { %s1850_s8 = smov (!%p138_p2), 321   ;;  %s1851_s10 = smov (!%p138_p2), 329  }
   0xb   : > { %v1689_v0 = vld [vmem:[%s2383_s1 + $0x74] ss:$8 sps:$4 sm:$0xff]   ;;  %v1691_v1 = vld [vmem:[%s2383_s1 + $0x70] ss:$8 sps:$4 sm:$0xff]   ;;  %v1692_v2 = vld [vmem:[%s2383_s1 + $0x64] ss:$8 sps:$4 sm:$0xff]  }
   0xc   : > { %460 = vmatprep.subr.bf16.mxu0 %v1689_v0  ;;  %v1694_v3 = vld [vmem:[%s2383_s1 + $0x60] ss:$8 sps:$4 sm:$0xff]   ;;  %v1695_v4 = vld [vmem:[%s2383_s1 + $0x54] ss:$8 sps:$4 sm:$0xff]   ;;  %v1697_v5 = vld [vmem:[%s2383_s1 + $0x50] ss:$8 sps:$4 sm:$0xff]  }
   0xd   : > { %461 = vmatpush1.bf16.msra.mxu0 %v1691_v1  ;;  %v1698_v6 = vld [vmem:[%s2383_s1 + $0x44] ss:$8 sps:$4 sm:$0xff]   ;;  %v1700_v7 = vld [vmem:[%s2383_s1 + $0x40] ss:$8 sps:$4 sm:$0xff]   ;;  %v1701_v8 = vld [vmem:[%s2383_s1 + $0x34] ss:$8 sps:$4 sm:$0xff]  }
   0xe   : > { %462 = vmatprep.subr.bf16.mxu0 %v1692_v2  ;;  %s2387_s13 = smov (!%p161_p3, %s1419_s13), 1  ;;  %v1703_v9 = vld [vmem:[%s2383_s1 + $0x30] ss:$8 sps:$4 sm:$0xff]   ;;  %v1704_v10 = vld [vmem:[%s2383_s1 + $0x24] ss:$8 sps:$4 sm:$0xff]   ;;  %vm661_vm0 = vcmask 523264  }
   0xf   : > { %s1502_s9 = sshll.u32 %s2387_s13, 7  ;;  %v1706_v11 = vld [vmem:[%s2383_s1 + $0x20] ss:$8 sps:$4 sm:$0xff]   ;;  %v1707_v12 = vld [vmem:[%s2383_s1 + $0x14] ss:$8 sps:$4 sm:$0xff]   ;;  %s1852_s11 = smov 337  }
  0x10   : > { %s1930_s16 = scalar_lea.vmem %s2382_s0, %s1502_s9  ;;  %v1709_v14 = vld [vmem:[%s2383_s1 + $0x10] ss:$8 sps:$4 sm:$0xff]   ;;  %v1710_v15 = vld [vmem:[%s2383_s1 + $0x4] ss:$8 sps:$4 sm:$0xff]   ;;  %v1712_v16 = vld [vmem:[%s2383_s1] ss:$8 sps:$4 sm:$0xff]   ;;  %s2345_s22 = scalar_lea.vmem %s2385_s3, %s1502_s9 }
  0x11   : > { %463 = vmatpush1.bf16.msra.mxu0 %v1694_v3  ;;  %v1739_v13 = vld [vmem:[%s1930_s16 + $0x4] ss:$8 sps:$4 sm:$0xff]   ;;  %v1713_v17 = vld [vmem:[%s2383_s1 + $0xf4] ss:$8 sps:$4 sm:$0xff]   ;;  %v1715_v18 = vld [vmem:[%s2383_s1 + $0xf0] ss:$8 sps:$4 sm:$0xff]  }
  0x12   : > { %464 = vmatprep.subr.bf16.mxu0 %v1695_v4  ;;  %492 = vmatprep.mubr.bf16.mxu0 %v1739_v13  ;;  %v1716_v19 = vld [vmem:[%s2383_s1 + $0xe4] ss:$8 sps:$4 sm:$0xff]   ;;  %v1761_v20 = vld [vmem:[%s2384_s2 + $0x38] sm:$0xff]   ;;  %v1762_v21 = vld [vmem:[%s2384_s2 + $0x30] sm:$0xff]   ;;  %s1853_s14 = smov 345   ;;  %s1854_s15 = smov 353  }
  0x13   : > { %1648 = vmatprep.subr.msk.bf16.mxu1 %vm661_vm0, %v1761_v20  ;;  %v708_v22 = vsel %vm661_vm0, %v1761_v20, 0  ;;  %v1718_v23 = vld [vmem:[%s2383_s1 + $0xe0] ss:$8 sps:$4 sm:$0xff]   ;;  %v1719_v24 = vld [vmem:[%s2383_s1 + $0xd4] ss:$8 sps:$4 sm:$0xff]   ;;  %v705_v27 = vsel %vm661_vm0, %v1762_v21, 0 }
  0x14   : > { %1553 = vmatpush3.bf16.xpose.msra.mxu1 %v708_v22  ;;  %v1721_v25 = vld [vmem:[%s2383_s1 + $0xd0] ss:$8 sps:$4 sm:$0xff]   ;;  %v1722_v26 = vld [vmem:[%s2383_s1 + $0xc4] ss:$8 sps:$4 sm:$0xff]   ;;  %v1724_v29 = vld [vmem:[%s2383_s1 + $0xc0] ss:$8 sps:$4 sm:$0xff]  }
  0x15   : > { %465 = vmatpush1.bf16.msra.mxu0 %v1697_v5  ;;  %1649 = vmatprep.subr.msk.bf16.mxu1 %vm661_vm0, %v1762_v21  ;;  %v1763_v28 = vld [vmem:[%s2384_s2 + $0x28] sm:$0xff]   ;;  %v1725_v30 = vld [vmem:[%s2383_s1 + $0xb4] ss:$8 sps:$4 sm:$0xff]   ;;  %v1727_v31 = vld [vmem:[%s2383_s1 + $0xb0] ss:$8 sps:$4 sm:$0xff]   ;;  %s1855_s17 = smov 369  }
  0x16   : > { %466 = vmatprep.subr.bf16.mxu0 %v1698_v6  ;;  %v1728_v32 = vld [vmem:[%s2383_s1 + $0xa4] ss:$8 sps:$4 sm:$0xff]   ;;  %v702_v33 = vsel %vm661_vm0, %v1763_v28, 0  ;;  %v1730_v35 = vld [vmem:[%s2383_s1 + $0xa0] ss:$8 sps:$4 sm:$0xff]   ;;  %v1765_v40 = vld [vmem:[%s2384_s2 + $0x18] sm:$0xff]  }
  0x17   : > { %v1764_v34 = vld [vmem:[%s2384_s2 + $0x20] sm:$0xff]   ;;  %v1731_v36 = vld [vmem:[%s2383_s1 + $0x94] ss:$8 sps:$4 sm:$0xff]   ;;  %v1733_v37 = vld [vmem:[%s2383_s1 + $0x90] ss:$8 sps:$4 sm:$0xff]   ;;  %v696_v44 = vsel %vm661_vm0, %v1765_v40, 0 }
  0x18   : > { %v1734_v38 = vld [vmem:[%s2383_s1 + $0x84] ss:$8 sps:$4 sm:$0xff]   ;;  %v699_v39 = vsel %vm661_vm0, %v1764_v34, 0  ;;  %v1736_v41 = vld [vmem:[%s2383_s1 + $0x80] ss:$8 sps:$4 sm:$0xff]   ;;  %v1766_v45 = vld [vmem:[%s2384_s2 + $0x10] sm:$0xff]  }
  0x19   : > { %467 = vmatpush1.bf16.msra.mxu0 %v1700_v7  ;;  %v1737_v42 = vld [vmem:[%s1930_s16] ss:$8 sps:$4 sm:$0xff]   ;;  %v1740_v43 = vld [vmem:[%s1930_s16 + $0x14] ss:$8 sps:$4 sm:$0xff]   ;;  %v1742_v46 = vld [vmem:[%s1930_s16 + $0x10] ss:$8 sps:$4 sm:$0xff]  }
  0x1a   : > { %468 = vmatprep.subr.bf16.mxu0 %v1701_v8  ;;  %v1743_v47 = vld [vmem:[%s1930_s16 + $0x24] ss:$8 sps:$4 sm:$0xff]   ;;  %v693_v48 = vsel %vm661_vm0, %v1766_v45, 0  ;;  %v1745_v50 = vld [vmem:[%s1930_s16 + $0x20] ss:$8 sps:$4 sm:$0xff]   ;;  %s1856_s18 = smov 361  }
  0x1b   : > { %v1767_v49 = vld [vmem:[%s2384_s2 + $0x8] sm:$0xff]   ;;  %v1746_v51 = vld [vmem:[%s1930_s16 + $0x34] ss:$8 sps:$4 sm:$0xff]   ;;  %v1748_v52 = vld [vmem:[%s1930_s16 + $0x30] ss:$8 sps:$4 sm:$0xff]   ;;  %s1857_s19 = smov 377  }
  0x1c   : > { %1555 = vmatpush3.bf16.xpose.msra.mxu1 %v705_v27  ;;  %v1749_v53 = vld [vmem:[%s1930_s16 + $0x44] ss:$8 sps:$4 sm:$0xff]   ;;  %v1751_v54 = vld [vmem:[%s1930_s16 + $0x40] ss:$8 sps:$4 sm:$0xff]   ;;  %v1752_v55 = vld [vmem:[%s1930_s16 + $0x54] ss:$8 sps:$4 sm:$0xff]  }
  0x1d   : > { %469 = vmatpush1.bf16.msra.mxu0 %v1703_v9  ;;  %1650 = vmatprep.subr.msk.bf16.mxu1 %vm661_vm0, %v1763_v28  ;;  %v1754_v56 = vld [vmem:[%s1930_s16 + $0x50] ss:$8 sps:$4 sm:$0xff]   ;;  %v1755_v57 = vld [vmem:[%s1930_s16 + $0x64] ss:$8 sps:$4 sm:$0xff]   ;;  %v1757_v58 = vld [vmem:[%s1930_s16 + $0x60] ss:$8 sps:$4 sm:$0xff]  }
  0x1e   : > { %470 = vmatprep.subr.bf16.mxu0 %v1704_v10  ;;  %v1758_v59 = vld [vmem:[%s1930_s16 + $0x74] ss:$8 sps:$4 sm:$0xff]   ;;  %v1760_v60 = vld [vmem:[%s1930_s16 + $0x70] ss:$8 sps:$4 sm:$0xff]   ;;  %v690_v61 = vsel %vm661_vm0, %v1767_v49, 0  ;;  %v1768_v62 = vld [vmem:[%s2384_s2] sm:$0xff]  }
  0x1f   : > { %v687_v63 = vsel %vm661_vm0, %v1768_v62, 0  ;;  %s1841_s16 = smov 64  }
  0x21   : > { %471 = vmatpush1.bf16.msra.mxu0 %v1706_v11 }
  0x22   : > { %472 = vmatprep.subr.bf16.mxu0 %v1707_v12 }
  0x24   : > { %1557 = vmatpush3.bf16.xpose.msra.mxu1 %v702_v33 }
  0x25   : > { %473 = vmatpush1.bf16.msra.mxu0 %v1709_v14  ;;  %1651 = vmatprep.subr.msk.bf16.mxu1 %vm661_vm0, %v1764_v34 }
  0x26   : > { %474 = vmatprep.subr.bf16.mxu0 %v1710_v15 }
  0x29   : > { %475 = vmatpush1.bf16.msra.mxu0 %v1712_v16 }
  0x2a   : > { %476 = vmatprep.subr.bf16.mxu0 %v1713_v17 }
  0x2c   : > { %1559 = vmatpush3.bf16.xpose.msra.mxu1 %v699_v39 }
  0x2d   : > { %477 = vmatpush2.bf16.msra.mxu0 %v1715_v18  ;;  %1652 = vmatprep.subr.msk.bf16.mxu1 %vm661_vm0, %v1765_v40 }
  0x2e   : > { %478 = vmatprep.subr.bf16.mxu0 %v1716_v19 }
  0x31   : > { %479 = vmatpush2.bf16.msra.mxu0 %v1718_v23 }
  0x32   : > { %480 = vmatprep.subr.bf16.mxu0 %v1719_v24 }
  0x34   : > { %1561 = vmatpush3.bf16.xpose.msra.mxu1 %v696_v44 }
  0x35   : > { %481 = vmatpush2.bf16.msra.mxu0 %v1721_v25  ;;  %1653 = vmatprep.subr.msk.bf16.mxu1 %vm661_vm0, %v1766_v45 }
  0x36   : > { %482 = vmatprep.subr.bf16.mxu0 %v1722_v26 }
  0x39   : > { %483 = vmatpush2.bf16.msra.mxu0 %v1724_v29 }
  0x3a   : > { %484 = vmatprep.subr.bf16.mxu0 %v1725_v30 }
  0x3c   : > { %1563 = vmatpush3.bf16.xpose.msra.mxu1 %v693_v48 }
  0x3d   : > { %485 = vmatpush2.bf16.msra.mxu0 %v1727_v31  ;;  %1654 = vmatprep.subr.msk.bf16.mxu1 %vm661_vm0, %v1767_v49 }
  0x3e   : > { %486 = vmatprep.subr.bf16.mxu0 %v1728_v32 }
  0x41   : > { %487 = vmatpush2.bf16.msra.mxu0 %v1730_v35 }
  0x42   : > { %488 = vmatprep.subr.bf16.mxu0 %v1731_v36 }
  0x44   : > { %1565 = vmatpush3.bf16.xpose.msra.mxu1 %v690_v61 }
  0x45   : > { %489 = vmatpush2.bf16.msra.mxu0 %v1733_v37  ;;  %1655 = vmatprep.subr.msk.bf16.mxu1 %vm661_vm0, %v1768_v62 }
  0x46   : > { %490 = vmatprep.subr.bf16.mxu0 %v1734_v38 }
  0x49   : > { %491 = vmatpush2.bf16.msra.mxu0 %v1736_v41 }
  0x4c   : > { %493 = vmatmul.mubr.bf16.vlgmr.msra.gmra.mxu0 %v1737_v42  ;;  %1567 = vmatpush3.bf16.xpose.msra.mxu1 %v687_v63 }
  0x4d   : > { %502 = vmatprep.mubr.bf16.mxu0 %v1740_v43 }
  0x54   : > { %503 = vmatmul.mubr.bf16.gmra.mxu0 %v1742_v46 }
  0x55   : > { %512 = vmatprep.mubr.bf16.mxu0 %v1743_v47 }
  0x5c   : > { %513 = vmatmul.mubr.bf16.gmra.mxu0 %v1745_v50 }
  0x5d   : > { %522 = vmatprep.mubr.bf16.mxu0 %v1746_v51 }
  0x64   : > { %523 = vmatmul.mubr.bf16.gmra.mxu0 %v1748_v52 }
  0x65   : > { %532 = vmatprep.mubr.bf16.mxu0 %v1749_v53 }
  0x6c   : > { %533 = vmatmul.mubr.bf16.gmra.mxu0 %v1751_v54 }
  0x6d   : > { %542 = vmatprep.mubr.bf16.mxu0 %v1752_v55 }
  0x74   : > { %543 = vmatmul.mubr.bf16.gmra.mxu0 %v1754_v56 }
  0x75   : > { %552 = vmatprep.mubr.bf16.mxu0 %v1755_v57 }
  0x7c   : > { %553 = vmatmul.mubr.bf16.gmra.mxu0 %v1757_v58 }
  0x7d   : > { %562 = vmatprep.mubr.bf16.mxu0 %v1758_v59 }
  0x84   : > { %563 = vmatmul.mubr.bf16.gmra.mxu0 %v1760_v60 }
 0x10c   : > { %v494_v0 = vpop.f32.mrf.mxu0 }
 0x10d   : > { %v573_v3 = vmul.f32 0.125, %v494_v0 }
 0x10e   : > { %v496_v1 = vpop.f32.mrf.mxu0 }
 0x110   : > { %v498_v2 = vpop.f32.mrf.mxu0 }
 0x111   : > { %v574_v4 = vmul.f32 0.125, %v498_v2  ;;  %v2048_v5 = vpack.c.bf16 %v498_v2, %v494_v0 }
 0x112   : > { %v500_v6 = vpop.f32.mrf.mxu0 }
 0x113   : > { %v589_v7 = vpack.c.bf16 %v574_v4, %v573_v3  ;;  %v2050_v8 = vpack.c.bf16 %v500_v6, %v496_v1  ;;  %1568 = vmatprep.mubr.msk.bf16.mxu1 %vm661_vm0, %v2048_v5 }
 0x114   : > { %v504_v9 = vpop.f32.mrf.mxu0 }
 0x115   : > { %1600 = vmatprep.mubr.msk.bf16.mxu0 %vm661_vm0, %v589_v7  ;;  %v2055_v12 = vmul.f32 0.125, %v504_v9 }
 0x116   : > { %v506_v10 = vpop.f32.mrf.mxu0 }
 0x118   : > { %v508_v11 = vpop.f32.mrf.mxu0 }
 0x119   : > { %v2057_v13 = vmul.f32 0.125, %v508_v11  ;;  %v2059_v14 = vpack.c.bf16 %v508_v11, %v504_v9 }
 0x11a   : > { %v510_v15 = vpop.f32.mrf.mxu0 }
 0x11b   : > { %v590_v16 = vpack.c.bf16 %v2057_v13, %v2055_v12  ;;  %v2063_v17 = vpack.c.bf16 %v510_v15, %v506_v10  ;;  %1569 = vmatmul.mubr.msk.bf16.vlgmr.msra.gmra.mxu1 %vm661_vm0, %v2059_v14 }
 0x11c   : > { %v514_v18 = vpop.f32.mrf.mxu0 }
 0x11d   : > { %v2069_v21 = vmul.f32 0.125, %v514_v18 }
 0x11e   : > { %v2067_v19 = vpop.f32.mrf.mxu0 }
 0x120   : > { %v518_v20 = vpop.f32.mrf.mxu0 }
 0x121   : > { %v2071_v22 = vmul.f32 0.125, %v518_v20  ;;  %v599_v23 = vpack.c.bf16 %v518_v20, %v514_v18 }
 0x122   : > { %v2073_v24 = vpop.f32.mrf.mxu0 }
 0x123   : > { %v591_v25 = vpack.c.bf16 %v2071_v22, %v2069_v21  ;;  %1572 = vmatprep.mubr.msk.bf16.mxu1 %vm661_vm0, %v599_v23  ;;  %v1245_v7 = vpack.c.bf16 %v2073_v24, %v2067_v19 }
 0x124   : > { %v524_v26 = vpop.f32.mrf.mxu0 }
 0x125   : > { %v2080_v29 = vmul.f32 0.125, %v524_v26 }
 0x126   : > { %v2078_v27 = vpop.f32.mrf.mxu0 }
 0x128   : > { %v528_v28 = vpop.f32.mrf.mxu0 }
 0x129   : > { %v2082_v30 = vmul.f32 0.125, %v528_v28  ;;  %v600_v31 = vpack.c.bf16 %v528_v28, %v524_v26 }
 0x12a   : > { %v530_v32 = vpop.f32.mrf.mxu0 }
 0x12b   : > { %v592_v33 = vpack.c.bf16 %v2082_v30, %v2080_v29  ;;  %1573 = vmatmul.mubr.msk.bf16.gmra.mxu1 %vm661_vm0, %v600_v31  ;;  %v1246_v6 = vpack.c.bf16 %v530_v32, %v2078_v27 }
 0x12c   : > { %v534_v34 = vpop.f32.mrf.mxu0 }
 0x12d   : > { %v2087_v37 = vmul.f32 0.125, %v534_v34 }
 0x12e   : > { %v536_v35 = vpop.f32.mrf.mxu0 }
 0x130   : > { %v538_v36 = vpop.f32.mrf.mxu0 }
 0x131   : > { %v2089_v38 = vmul.f32 0.125, %v538_v36  ;;  %v601_v39 = vpack.c.bf16 %v538_v36, %v534_v34 }
 0x132   : > { %v540_v40 = vpop.f32.mrf.mxu0 }
 0x133   : > { %v593_v41 = vpack.c.bf16 %v2089_v38, %v2087_v37  ;;  %1576 = vmatprep.mubr.msk.bf16.mxu1 %vm661_vm0, %v601_v39 }
 0x134   : > { %v544_v42 = vpop.f32.mrf.mxu0 }
 0x135   : > { %v2094_v45 = vmul.f32 0.125, %v544_v42 }
 0x136   : > { %v546_v43 = vpop.f32.mrf.mxu0 }
 0x138   : > { %v548_v44 = vpop.f32.mrf.mxu0 }
 0x139   : > { %v2096_v46 = vmul.f32 0.125, %v548_v44  ;;  %v602_v47 = vpack.c.bf16 %v548_v44, %v544_v42 }
 0x13a   : > { %v550_v48 = vpop.f32.mrf.mxu0 }
 0x13b   : > { %v594_v49 = vpack.c.bf16 %v2096_v46, %v2094_v45  ;;  %889 = vrot.lane.b32.xlu1 %v602_v47, %s1841_s16  ;;  %1577 = vmatmul.mubr.msk.bf16.gmra.mxu1 %vm661_vm0, %v602_v47  ;;  %v1248_v4 = vpack.c.bf16 %v550_v48, %v546_v43 }
 0x13c   : > { %v554_v50 = vpop.f32.mrf.mxu0 }
 0x13d   : > { %v2103_v53 = vmul.f32 0.125, %v554_v50 }
 0x13e   : > { %v556_v51 = vpop.f32.mrf.mxu0 }
 0x13f   : > { %887 = vrot.lane.b32.xlu1 %v601_v39, %s1841_s16 }
 0x140   : > { %v558_v52 = vpop.f32.mrf.mxu0 }
 0x141   : > { %v2105_v54 = vmul.f32 0.125, %v558_v52  ;;  %v603_v55 = vpack.c.bf16 %v558_v52, %v554_v50 }
 0x142   : > { %v560_v56 = vpop.f32.mrf.mxu0 }
 0x143   : > { %v595_v57 = vpack.c.bf16 %v2105_v54, %v2103_v53  ;;  %883 = vrot.lane.b32.xlu1 %v599_v23, %s1841_s16  ;;  %1580 = vmatprep.mubr.msk.bf16.mxu1 %vm661_vm0, %v603_v55  ;;  %v1249_v3 = vpack.c.bf16 %v560_v56, %v556_v51 }
 0x144   : > { %v564_v58 = vpop.f32.mrf.mxu0 }
 0x145   : > { %v2113_v61 = vmul.f32 0.125, %v564_v58 }
 0x146   : > { %v566_v59 = vpop.f32.mrf.mxu0 }
 0x147   : > { %879 = vrot.lane.b32.xlu1 %v2048_v5, %s1841_s16  ;;  %v1247_v5 = vpack.c.bf16 %v540_v40, %v536_v35 }
 0x148   : > { %v568_v60 = vpop.f32.mrf.mxu0 }
 0x149   : > { %v2115_v62 = vmul.f32 0.125, %v568_v60  ;;  %v604_v63 = vpack.c.bf16 %v568_v60, %v564_v58 }
 0x14a   : > { %v570_v0 = vpop.f32.mrf.mxu0 }
 0x14b   : > { %v596_v1 = vpack.c.bf16 %v2115_v62, %v2113_v61  ;;  %v1250_v2 = vpack.c.bf16 %v570_v0, %v566_v59  ;;  %893 = vrot.lane.b32.xlu0 %v604_v63, %s1841_s16  ;;  %1581 = vmatmul.mubr.msk.bf16.gmra.mxu1 %vm661_vm0, %v604_v63 }
 0x14d   : > { %1616 = vmatprep.subr.bf16.mxu1 %v1250_v2 }
 0x14e   : > { %1617 = vmatpush3.bf16.msra.mxu1 %v1250_v2 }
 0x14f   : > { %891 = vrot.lane.b32.xlu0 %v603_v55, %s1841_s16  ;;  %1618 = vmatprep.subr.bf16.mxu1 %v1249_v3 }
 0x152   : > { %1619 = vmatpush3.bf16.msra.mxu1 %v1249_v3 }
 0x153   : > { %885 = vrot.lane.b32.xlu0 %v600_v31, %s1841_s16  ;;  %1620 = vmatprep.subr.bf16.mxu1 %v1248_v4 }
 0x156   : > { %1621 = vmatpush3.bf16.msra.mxu1 %v1248_v4 }
 0x157   : > { %881 = vrot.lane.b32.xlu0 %v2059_v14, %s1841_s16  ;;  %1622 = vmatprep.subr.bf16.mxu1 %v1247_v5 }
 0x15a   : > { %1623 = vmatpush3.bf16.msra.mxu1 %v1247_v5 }
 0x15b   : > { %1624 = vmatprep.subr.bf16.mxu1 %v1246_v6 }
 0x15e   : > { %1625 = vmatpush3.bf16.msra.mxu1 %v1246_v6 }
 0x15f   : > { %1626 = vmatprep.subr.bf16.mxu1 %v1245_v7 }
 0x162   : > { %1627 = vmatpush3.bf16.msra.mxu1 %v1245_v7 }
 0x163   : > { %1628 = vmatprep.subr.bf16.mxu1 %v2063_v17 }
 0x166   : > { %1629 = vmatpush3.bf16.msra.mxu1 %v2063_v17 }
 0x167   : > { %1630 = vmatprep.subr.bf16.mxu1 %v2050_v8 }
 0x16a   : > { %1631 = vmatpush3.bf16.msra.mxu1 %v2050_v8 }
 0x1ad   : > { %v890_v15 = vpop.permute.xlu1 %889 }
 0x1ae   : > { %v935_v17 = vsel %vm661_vm0, %v890_v15, 0 }
 0x1b1   : > { %v888_v18 = vpop.permute.xlu1 %887 }
 0x1b2   : > { %v932_v8 = vsel %vm661_vm0, %v888_v18, 0 }
 0x1b5   : > { %v884_v26 = vpop.permute.xlu1 %883 }
 0x1b6   : > { %v926_v31 = vsel %vm661_vm0, %v884_v26, 0 }
 0x1b9   : > { %v880_v39 = vpop.permute.xlu1 %879 }
 0x1ba   : > { %v920_v43 = vsel %vm661_vm0, %v880_v39, 0 }
 0x1bd   : > { %v894_v9 = vpop.permute.xlu0 %893 }
 0x1be   : > { %v941_v10 = vsel %vm661_vm0, %v894_v9, 0  ;;  %1656 = vmatprep.subr.msk.bf16.mxu0 %vm661_vm0, %v894_v9 }
 0x1bf   : > { %1585 = vmatpush3.bf16.xpose.msra.mxu0 %v941_v10 }
 0x1c1   : > { %v892_v11 = vpop.permute.xlu0 %891 }
 0x1c2   : > { %1657 = vmatprep.subr.msk.bf16.mxu0 %vm661_vm0, %v892_v11  ;;  %v938_v14 = vsel %vm661_vm0, %v892_v11, 0 }
 0x1c5   : > { %v886_v19 = vpop.permute.xlu0 %885 }
 0x1c6   : > { %v929_v24 = vsel %vm661_vm0, %v886_v19, 0 }
 0x1c7   : > { %1587 = vmatpush3.bf16.xpose.msra.mxu0 %v938_v14 }
 0x1c8   : > { %1658 = vmatprep.subr.msk.bf16.mxu0 %vm661_vm0, %v890_v15 }
 0x1c9   : > { %v882_v32 = vpop.permute.xlu0 %881 }
 0x1ca   : > { %v923_v36 = vsel %vm661_vm0, %v882_v32, 0 }
 0x1cf   : > { %1589 = vmatpush3.bf16.xpose.msra.mxu0 %v935_v17 }
 0x1d0   : > { %1659 = vmatprep.subr.msk.bf16.mxu0 %vm661_vm0, %v888_v18 }
 0x1d7   : > { %1591 = vmatpush3.bf16.xpose.msra.mxu0 %v932_v8 }
 0x1d8   : > { %1660 = vmatprep.subr.msk.bf16.mxu0 %vm661_vm0, %v886_v19 }
 0x1db   : > { %v1570_v20 = vpop.f32.mrf.mxu1 }
 0x1dd   : > { %v744_v23 = vpop.f32.mrf.mxu1 }
 0x1de   : > { %809 = vrot.lane.b32.xlu0 %v744_v23, %s1842_s27 }
 0x1df   : > { %v1571_v27 = vpop.f32.mrf.mxu1  ;;  %1593 = vmatpush3.bf16.xpose.msra.mxu0 %v929_v24 }
 0x1e0   : > { %1661 = vmatprep.subr.msk.bf16.mxu0 %vm661_vm0, %v884_v26 }
 0x1e1   : > { %v747_v28 = vpop.f32.mrf.mxu1 }
 0x1e2   : > { %813 = vrot.lane.b32.xlu1 %v747_v28, %s1843_s28  ;;  %817 = vrot.lane.b32.xlu0 %v1570_v20, %s1844_s29 }
 0x1e6   : > { %821 = vrot.lane.b32.xlu1 %v1571_v27, %s1845_s30 }
 0x1e7   : > { %1595 = vmatpush3.bf16.xpose.msra.mxu0 %v926_v31 }
 0x1e8   : > { %1662 = vmatprep.subr.msk.bf16.mxu0 %vm661_vm0, %v882_v32 }
 0x1eb   : > { %v1574_v34 = vpop.f32.mrf.mxu1 }
 0x1ed   : > { %v760_v35 = vpop.f32.mrf.mxu1 }
 0x1ee   : > { %825 = vrot.lane.b32.xlu0 %v760_v35, %s1846_s4 }
 0x1ef   : > { %v1575_v40 = vpop.f32.mrf.mxu1  ;;  %1597 = vmatpush3.bf16.xpose.msra.mxu0 %v923_v36 }
 0x1f0   : > { %1663 = vmatprep.subr.msk.bf16.mxu0 %vm661_vm0, %v880_v39 }
 0x1f1   : > { %v763_v42 = vpop.f32.mrf.mxu1 }
 0x1f2   : > { %829 = vrot.lane.b32.xlu1 %v763_v42, %s1847_s5  ;;  %833 = vrot.lane.b32.xlu0 %v1574_v34, %s1848_s6 }
 0x1f6   : > { %837 = vrot.lane.b32.xlu1 %v1575_v40, %s1849_s7 }
 0x1f7   : > { %1599 = vmatpush3.bf16.xpose.msra.mxu0 %v920_v43 }
 0x1fb   : > { %v1578_v44 = vpop.f32.mrf.mxu1 }
 0x1fd   : > { %v776_v47 = vpop.f32.mrf.mxu1 }
 0x1fe   : > { %841 = vrot.lane.b32.xlu0 %v776_v47, %s1850_s8  ;;  %1601 = vmatmul.mubr.msk.bf16.vlgmr.msra.gmra.mxu0 %vm661_vm0, %v590_v16 }
 0x1ff   : > { %v1579_v48 = vpop.f32.mrf.mxu1  ;;  %1604 = vmatprep.mubr.msk.bf16.mxu0 %vm661_vm0, %v591_v25  ;;  %v1040_v25 = vlaneseq }
 0x201   : > { %v779_v50 = vpop.f32.mrf.mxu1  ;;  %v2178_v38 = vand.u32 127, %v1040_v25 }
 0x202   : > { %845 = vrot.lane.b32.xlu1 %v779_v50, %s1851_s10  ;;  %849 = vrot.lane.b32.xlu0 %v1578_v44, %s1852_s11 }
 0x206   : > { %853 = vrot.lane.b32.xlu1 %v1579_v48, %s1853_s14  ;;  %1605 = vmatmul.mubr.msk.bf16.gmra.mxu0 %vm661_vm0, %v592_v33  ;;  %v2176_v33 = vshrl.u32 %v1040_v25, 7 }
 0x207   : > { %1608 = vmatprep.mubr.msk.bf16.mxu0 %vm661_vm0, %v593_v41 }
 0x208   : > { %vm1059_vm1 = vcmp.le.s32.totalorder %v2178_v38, %v2176_v33  ;;  %v1043_v51 = vadd.s32 16, %v2176_v33  ;;  %v1045_v58 = vadd.s32 32, %v2176_v33  ;;  %v1044_v59 = vadd.s32 24, %v2176_v33 }
 0x209   : > { %v1047_v3 = vadd.s32 48, %v2176_v33  ;;  %v1046_v4 = vadd.s32 40, %v2176_v33  ;;  %v1049_v17 = vadd.s32 64, %v2176_v33  ;;  %v1048_v18 = vadd.s32 56, %v2176_v33 }
 0x20a   : > { %vm1061_vm3 = vcmp.le.s32.totalorder %v2178_v38, %v1043_v51  ;;  %vm1063_vm4 = vcmp.le.s32.totalorder %v2178_v38, %v1045_v58  ;;  %vm1062_vm5 = vcmp.le.s32.totalorder %v2178_v38, %v1044_v59  ;;  %v1051_v31 = vadd.s32 80, %v2176_v33 }
 0x20b   : > { %v1582_v12 = vpop.f32.mrf.mxu1  ;;  %vm1065_vm6 = vcmp.le.s32.totalorder %v2178_v38, %v1047_v3  ;;  %vm1064_vm7 = vcmp.le.s32.totalorder %v2178_v38, %v1046_v4  ;;  %vm1067_vm8 = vcmp.le.s32.totalorder %v2178_v38, %v1049_v17  ;;  %vm1066_vm9 = vcmp.le.s32.totalorder %v2178_v38, %v1048_v18 }
 0x20c   : > { %v1050_v32 = vadd.s32 72, %v2176_v33  ;;  %vm1069_vm10 = vcmp.le.s32.totalorder %v2178_v38, %v1051_v31  ;;  %v1053_v47 = vadd.s32 96, %v2176_v33  ;;  %v1052_v48 = vadd.s32 88, %v2176_v33 }
 0x20d   : > { %v792_v13 = vpop.f32.mrf.mxu1 }
 0x20e   : > { %1609 = vmatmul.mubr.msk.bf16.gmra.mxu0 %vm661_vm0, %v594_v49  ;;  %857 = vrot.lane.b32.xlu0 %v792_v13, %s1854_s15  ;;  %v1042_v49 = vadd.s32 8, %v2176_v33  ;;  %vm1068_vm11 = vcmp.le.s32.totalorder %v2178_v38, %v1050_v32  ;;  %vm1071_vm12 = vcmp.le.s32.totalorder %v2178_v38, %v1053_v47  ;;  %vm1070_vm13 = vcmp.le.s32.totalorder %v2178_v38, %v1052_v48 }
 0x20f   : > { %v1583_v16 = vpop.f32.mrf.mxu1  ;;  %1612 = vmatprep.mubr.msk.bf16.mxu0 %vm661_vm0, %v595_v57 }
 0x210   : > { %vm1060_vm2 = vcmp.le.s32.totalorder %v2178_v38, %v1042_v49 }
 0x211   : > { %v795_v21 = vpop.f32.mrf.mxu1 }
 0x212   : > { %865 = vrot.lane.b32.xlu0 %v1582_v12, %s1855_s17  ;;  %861 = vrot.lane.b32.xlu1 %v795_v21, %s1856_s18 }
 0x216   : > { %869 = vrot.lane.b32.xlu1 %v1583_v16, %s1857_s19  ;;  %1613 = vmatmul.mubr.msk.bf16.gmra.mxu0 %vm661_vm0, %v596_v1 }
 0x250   : > { %v810_v22 = vpop.permute.xlu0 %809 }
 0x254   : > { %v814_v29 = vpop.permute.xlu1 %813  ;;  %v818_v30 = vpop.permute.xlu0 %817 }
 0x258   : > { %v822_v41 = vpop.permute.xlu1 %821 }
 0x260   : > { %v826_v45 = vpop.permute.xlu0 %825 }
 0x264   : > { %v830_v54 = vpop.permute.xlu1 %829  ;;  %v834_v61 = vpop.permute.xlu0 %833 }
 0x268   : > { %v838_v5 = vpop.permute.xlu1 %837 }
 0x270   : > { %v842_v7 = vpop.permute.xlu0 %841 }
 0x274   : > { %v846_v8 = vpop.permute.xlu1 %845  ;;  %v850_v27 = vpop.permute.xlu0 %849 }
 0x278   : > { %v854_v36 = vpop.permute.xlu1 %853 }
 0x280   : > { %v858_v43 = vpop.permute.xlu0 %857 }
 0x2be   : > { %v1602_v37 = vpop.f32.mrf.mxu0 }
 0x2bf   : > { %v986_v55 = vadd.f32 %v1602_v37, %v818_v30  ;;  %v1054_v30 = vadd.s32 104, %v2176_v33 }
 0x2c0   : > { %v977_v46 = vpop.f32.mrf.mxu0 }
 0x2c1   : > { %v978_v52 = vadd.f32 %v977_v46, %v810_v22  ;;  %v2193_v1 = vsel %vm1061_vm3, %v986_v55, -inf  ;;  %v862_v22 = vpop.permute.xlu1 %861  ;;  %vm1072_vm15 = vcmp.le.s32.totalorder %v2178_v38, %v1054_v30 }
 0x2c2   : > { %v1603_v53 = vpop.f32.mrf.mxu0 }
 0x2c3   : > { %v2184_v56 = vsel %vm1059_vm1, %v978_v52, -inf  ;;  %v989_v63 = vadd.f32 %v1603_v53, %v822_v41  ;;  %v866_v41 = vpop.permute.xlu0 %865  ;;  %v1056_v53 = vadd.s32 120, %v2176_v33 }
 0x2c4   : > { %v980_v57 = vpop.f32.mrf.mxu0  ;;  %1091 = vmax.xlane.f32.xlu0 %v2184_v56 }
 0x2c5   : > { %v981_v60 = vadd.f32 %v980_v57, %v814_v29  ;;  %v2203_v14 = vsel %vm1062_vm5, %v989_v63, -inf  ;;  %v1055_v29 = vadd.s32 112, %v2176_v33  ;;  %v870_v55 = vpop.permute.xlu1 %869  ;;  %vm1074_vm1 = vcmp.le.s32.totalorder %v2178_v38, %v1056_v53 }
 0x2c6   : > { %v1606_v62 = vpop.f32.mrf.mxu0 }
 0x2c7   : > { %v2191_v0 = vsel %vm1060_vm2, %v981_v60, -inf  ;;  %v1002_v10 = vadd.f32 %v1606_v62, %v834_v61  ;;  %vm1073_vm14 = vcmp.le.s32.totalorder %v2178_v38, %v1055_v29 }
 0x2c8   : > { %v993_v2 = vpop.f32.mrf.mxu0  ;;  %1093 = vmax.xlane.f32.xlu1 %v2191_v0  ;;  %1095 = vmax.xlane.f32.xlu0 %v2193_v1 }
 0x2c9   : > { %v994_v6 = vadd.f32 %v993_v2, %v826_v45  ;;  %v2211_v24 = vsel %vm1065_vm6, %v1002_v10, -inf }
 0x2ca   : > { %v1607_v9 = vpop.f32.mrf.mxu0 }
 0x2cb   : > { %v2201_v11 = vsel %vm1063_vm4, %v994_v6, -inf  ;;  %v1005_v23 = vadd.f32 %v1607_v9, %v838_v5 }
 0x2cc   : > { %v996_v15 = vpop.f32.mrf.mxu0  ;;  %1099 = vmax.xlane.f32.xlu1 %v2201_v11  ;;  %1097 = vmax.xlane.f32.xlu0 %v2203_v14 }
 0x2cd   : > { %v997_v19 = vadd.f32 %v996_v15, %v830_v54  ;;  %v2223_v42 = vsel %vm1066_vm9, %v1005_v23, -inf }
 0x2ce   : > { %v1610_v20 = vpop.f32.mrf.mxu0 }
 0x2cf   : > { %v2213_v26 = vsel %vm1064_vm7, %v997_v19, -inf  ;;  %v1018_v39 = vadd.f32 %v1610_v20, %v850_v27 }
 0x2d0   : > { %v1009_v28 = vpop.f32.mrf.mxu0  ;;  %1103 = vmax.xlane.f32.xlu1 %v2211_v24  ;;  %1101 = vmax.xlane.f32.xlu0 %v2213_v26 }
 0x2d1   : > { %v1010_v34 = vadd.f32 %v1009_v28, %v842_v7  ;;  %v2231_v16 = vsel %vm1069_vm10, %v1018_v39, -inf }
 0x2d2   : > { %v1611_v35 = vpop.f32.mrf.mxu0 }
 0x2d3   : > { %v2221_v40 = vsel %vm1067_vm8, %v1010_v34, -inf  ;;  %v1021_v13 = vadd.f32 %v1611_v35, %v854_v36 }
 0x2d4   : > { %v1012_v44 = vpop.f32.mrf.mxu0  ;;  %1107 = vmax.xlane.f32.xlu1 %v2221_v40  ;;  %1105 = vmax.xlane.f32.xlu0 %v2223_v42 }
 0x2d5   : > { %v1013_v50 = vadd.f32 %v1012_v44, %v846_v8  ;;  %v2243_v51 = vsel %vm1070_vm13, %v1021_v13, -inf }
 0x2d6   : > { %v1614_v12 = vpop.f32.mrf.mxu0 }
 0x2d7   : > { %v2233_v21 = vsel %vm1068_vm11, %v1013_v50, -inf  ;;  %v1034_v46 = vadd.f32 %v1614_v12, %v866_v41 }
 0x2d8   : > { %v1025_v25 = vpop.f32.mrf.mxu0  ;;  %1111 = vmax.xlane.f32.xlu1 %v2231_v16  ;;  %1109 = vmax.xlane.f32.xlu0 %v2233_v21 }
 0x2d9   : > { %v1026_v37 = vadd.f32 %v1025_v25, %v858_v43  ;;  %v2250_v58 = vsel %vm1073_vm14, %v1034_v46, -inf }
 0x2da   : > { %v1615_v45 = vpop.f32.mrf.mxu0 }
 0x2db   : > { %v2241_v49 = vsel %vm1071_vm12, %v1026_v37, -inf  ;;  %v1037_v57 = vadd.f32 %v1615_v45, %v870_v55 }
 0x2dc   : > { %v1028_v52 = vpop.f32.mrf.mxu0  ;;  %1115 = vmax.xlane.f32.xlu1 %v2241_v49  ;;  %1113 = vmax.xlane.f32.xlu0 %v2243_v51 }
 0x2dd   : > { %v1029_v54 = vadd.f32 %v1028_v52, %v862_v22  ;;  %v2257_v60 = vsel %vm1074_vm1, %v1037_v57, -inf }
 0x2df   : > { %v2252_v59 = vsel %vm1072_vm15, %v1029_v54, -inf }
 0x2e0   : > { %1119 = vmax.xlane.f32.xlu1 %v2250_v58  ;;  %1117 = vmax.xlane.f32.xlu0 %v2252_v59 }
 0x2e4   : > { %1121 = vmax.xlane.f32.xlu0 %v2257_v60 }
 0x34d   : > { %v1092_v61 = vpop.xlane.xlu0 %1091 }
 0x34e   : > { %v1123_v33 = vsub.f32 %v2184_v56, %v1092_v61 }
 0x350   : > { %v1139_v62 = vmul.f32 1.442695, %v1123_v33 }
 0x351   : > { %v1094_v63 = vpop.xlane.xlu1 %1093  ;;  %v1096_v2 = vpop.xlane.xlu0 %1095 }
 0x352   : > { %1769 = vpow2.f32 %v1139_v62  ;;  %v1124_v3 = vsub.f32 %v2191_v0, %v1094_v63  ;;  %v1125_v4 = vsub.f32 %v2193_v1, %v1096_v2 }
 0x354   : > { %v1141_v5 = vmul.f32 1.442695, %v1124_v3  ;;  %v1143_v6 = vmul.f32 1.442695, %v1125_v4 }
 0x355   : > { %v1100_v7 = vpop.xlane.xlu1 %1099  ;;  %v1098_v9 = vpop.xlane.xlu0 %1097 }
 0x356   : > { %1771 = vpow2.f32 %v1141_v5  ;;  %v1127_v38 = vsub.f32 %v2201_v11, %v1100_v7  ;;  %v1126_v10 = vsub.f32 %v2203_v14, %v1098_v9 }
 0x357   : > { %1773 = vpow2.f32 %v1143_v6 }
 0x358   : > { %v1147_v15 = vmul.f32 1.442695, %v1127_v38  ;;  %v1145_v56 = vmul.f32 1.442695, %v1126_v10 }
 0x359   : > { %v1104_v17 = vpop.xlane.xlu1 %1103  ;;  %v1102_v18 = vpop.xlane.xlu0 %1101 }
 0x35a   : > { %1775 = vpow2.f32 %v1147_v15  ;;  %v1129_v8 = vsub.f32 %v2211_v24, %v1104_v17  ;;  %v1128_v0 = vsub.f32 %v2213_v26, %v1102_v18 }
 0x35b   : > { %1777 = vpow2.f32 %v1145_v56 }
 0x35c   : > { %v1151_v1 = vmul.f32 1.442695, %v1129_v8  ;;  %v1149_v19 = vmul.f32 1.442695, %v1128_v0 }
 0x35d   : > { %v1108_v20 = vpop.xlane.xlu1 %1107  ;;  %v1106_v23 = vpop.xlane.xlu0 %1105 }
 0x35e   : > { %1779 = vpow2.f32 %v1151_v1  ;;  %v1131_v11 = vsub.f32 %v2221_v40, %v1108_v20  ;;  %v1130_v14 = vsub.f32 %v2223_v42, %v1106_v23 }
 0x35f   : > { %v2269_v27 = vpop.eup %1769  ;;  %1781 = vpow2.f32 %v1149_v19 }
 0x360   : > { %v1155_v28 = vmul.f32 1.442695, %v1131_v11  ;;  %v1153_v31 = vmul.f32 1.442695, %v1130_v14  ;;  %1171 = vadd.xlane.f32.xlu1 %v2269_v27 }
 0x361   : > { %v1112_v24 = vpop.xlane.xlu1 %1111  ;;  %v1110_v32 = vpop.xlane.xlu0 %1109 }
 0x362   : > { %1783 = vpow2.f32 %v1155_v28  ;;  %v1133_v26 = vsub.f32 %v2231_v16, %v1112_v24  ;;  %v1132_v34 = vsub.f32 %v2233_v21, %v1110_v32 }
 0x363   : > { %v2274_v35 = vpop.eup %1771  ;;  %1785 = vpow2.f32 %v1153_v31 }
 0x364   : > { %v2276_v36 = vpop.eup %1773  ;;  %v1159_v39 = vmul.f32 1.442695, %v1133_v26  ;;  %v1157_v40 = vmul.f32 1.442695, %v1132_v34  ;;  %1173 = vadd.xlane.f32.xlu0 %v2274_v35 }
 0x365   : > { %1175 = vadd.xlane.f32.xlu1 %v2276_v36  ;;  %v1116_v42 = vpop.xlane.xlu1 %1115  ;;  %v1114_v43 = vpop.xlane.xlu0 %1113 }
 0x366   : > { %1787 = vpow2.f32 %v1159_v39  ;;  %v1135_v44 = vsub.f32 %v2241_v49, %v1116_v42  ;;  %v1134_v47 = vsub.f32 %v2243_v51, %v1114_v43 }
 0x367   : > { %v2282_v48 = vpop.eup %1775  ;;  %1789 = vpow2.f32 %v1157_v40 }
 0x368   : > { %v2284_v50 = vpop.eup %1777  ;;  %v1163_v12 = vmul.f32 1.442695, %v1135_v44  ;;  %v1161_v13 = vmul.f32 1.442695, %v1134_v47 }
 0x369   : > { %1179 = vadd.xlane.f32.xlu1 %v2282_v48  ;;  %1177 = vadd.xlane.f32.xlu0 %v2284_v50  ;;  %v1120_v16 = vpop.xlane.xlu1 %1119  ;;  %v1118_v21 = vpop.xlane.xlu0 %1117 }
 0x36a   : > { %1791 = vpow2.f32 %v1163_v12  ;;  %v1137_v22 = vsub.f32 %v2250_v58, %v1120_v16  ;;  %v1136_v25 = vsub.f32 %v2252_v59, %v1118_v21 }
 0x36b   : > { %v2290_v29 = vpop.eup %1779  ;;  %1793 = vpow2.f32 %v1161_v13 }
 0x36c   : > { %v2292_v30 = vpop.eup %1781  ;;  %v1167_v37 = vmul.f32 1.442695, %v1137_v22  ;;  %v1165_v41 = vmul.f32 1.442695, %v1136_v25 }
 0x36d   : > { %1183 = vadd.xlane.f32.xlu1 %v2290_v29  ;;  %1181 = vadd.xlane.f32.xlu0 %v2292_v30  ;;  %v1122_v45 = vpop.xlane.xlu0 %1121 }
 0x36e   : > { %1795 = vpow2.f32 %v1167_v37  ;;  %v1138_v46 = vsub.f32 %v2257_v60, %v1122_v45 }
 0x36f   : > { %v2297_v49 = vpop.eup %1783  ;;  %1797 = vpow2.f32 %v1165_v41 }
 0x370   : > { %v2299_v51 = vpop.eup %1785  ;;  %v1169_v52 = vmul.f32 1.442695, %v1138_v46 }
 0x371   : > { %1187 = vadd.xlane.f32.xlu1 %v2297_v49  ;;  %1185 = vadd.xlane.f32.xlu0 %v2299_v51 }
 0x372   : > { %1799 = vpow2.f32 %v1169_v52 }
 0x373   : > { %v2303_v53 = vpop.eup %1787 }
 0x374   : > { %v2305_v54 = vpop.eup %1789 }
 0x375   : > { %1191 = vadd.xlane.f32.xlu1 %v2303_v53  ;;  %1189 = vadd.xlane.f32.xlu0 %v2305_v54 }
 0x377   : > { %v2309_v55 = vpop.eup %1791 }
 0x378   : > { %v2311_v57 = vpop.eup %1793 }
 0x379   : > { %1195 = vadd.xlane.f32.xlu1 %v2309_v55  ;;  %1193 = vadd.xlane.f32.xlu0 %v2311_v57 }
 0x37b   : > { %v2315_v58 = vpop.eup %1795 }
 0x37c   : > { %v2317_v59 = vpop.eup %1797 }
 0x37d   : > { %1199 = vadd.xlane.f32.xlu1 %v2315_v58  ;;  %1197 = vadd.xlane.f32.xlu0 %v2317_v59 }
 0x37f   : > { %v2321_v60 = vpop.eup %1799 }
 0x381   : > { %1201 = vadd.xlane.f32.xlu0 %v2321_v60 }
 0x3e9   : > { %v1172_v61 = vpop.xlane.xlu1 %1171 }
 0x3ea   : > { %1801 = vrcp.f32 %v1172_v61 }
 0x3ed   : > { %v1174_v33 = vpop.xlane.xlu0 %1173 }
 0x3ee   : > { %v1176_v62 = vpop.xlane.xlu1 %1175  ;;  %1803 = vrcp.f32 %v1174_v33 }
 0x3ef   : > { %1805 = vrcp.f32 %v1176_v62 }
 0x3f2   : > { %v1180_v63 = vpop.xlane.xlu1 %1179  ;;  %v1178_v2 = vpop.xlane.xlu0 %1177 }
 0x3f3   : > { %1807 = vrcp.f32 %v1178_v2 }
 0x3f4   : > { %1809 = vrcp.f32 %v1180_v63 }
 0x3f6   : > { %v1184_v3 = vpop.xlane.xlu1 %1183  ;;  %v1182_v4 = vpop.xlane.xlu0 %1181 }
 0x3f7   : > { %1811 = vrcp.f32 %v1182_v4  ;;  %v1802_v5 = vpop.eup %1801 }
 0x3f8   : > { %1813 = vrcp.f32 %v1184_v3  ;;  %v1219_v38 = vmul.f32 %v1802_v5, %v2269_v27 }
 0x3fa   : > { %v1188_v6 = vpop.xlane.xlu1 %1187  ;;  %v1186_v7 = vpop.xlane.xlu0 %1185 }
 0x3fb   : > { %v1804_v9 = vpop.eup %1803  ;;  %1815 = vrcp.f32 %v1186_v7 }
 0x3fc   : > { %v1220_v10 = vmul.f32 %v1804_v9, %v2274_v35  ;;  %1817 = vrcp.f32 %v1188_v6  ;;  %v1806_v18 = vpop.eup %1805 }
 0x3fd   : > { %v1221_v19 = vmul.f32 %v1806_v18, %v2276_v36 }
 0x3fe   : > { %v1192_v15 = vpop.xlane.xlu1 %1191  ;;  %v1190_v56 = vpop.xlane.xlu0 %1189  ;;  %v1235_v17 = vpack.c.bf16 %v1220_v10, %v1219_v38 }
 0x3ff   : > { %1819 = vrcp.f32 %v1190_v56 }
 0x400   : > { %1632 = vmatprep.mubr.bf16.mxu1 %v1235_v17  ;;  %v1808_v8 = vpop.eup %1807  ;;  %1821 = vrcp.f32 %v1192_v15 }
 0x401   : > { %v1222_v20 = vmul.f32 %v1808_v8, %v2284_v50  ;;  %v1810_v23 = vpop.eup %1809 }
 0x402   : > { %v1196_v0 = vpop.xlane.xlu1 %1195  ;;  %v1194_v1 = vpop.xlane.xlu0 %1193  ;;  %v1223_v31 = vmul.f32 %v1810_v23, %v2282_v48 }
 0x403   : > { %1823 = vrcp.f32 %v1194_v1  ;;  %v1236_v11 = vpack.c.bf16 %v1222_v20, %v1221_v19 }
 0x404   : > { %v1812_v14 = vpop.eup %1811  ;;  %1825 = vrcp.f32 %v1196_v0 }
 0x405   : > { %1633 = vmatmul.mubr.bf16.vlgmr.msra.gmra.mxu1 %v1236_v11  ;;  %v1224_v24 = vmul.f32 %v1812_v14, %v2292_v30  ;;  %v1814_v32 = vpop.eup %1813 }
 0x406   : > { %v1200_v27 = vpop.xlane.xlu1 %1199  ;;  %v1198_v28 = vpop.xlane.xlu0 %1197  ;;  %v1225_v36 = vmul.f32 %v1814_v32, %v2290_v29 }
 0x407   : > { %1827 = vrcp.f32 %v1198_v28  ;;  %v1237_v26 = vpack.c.bf16 %v1224_v24, %v1223_v31 }
 0x408   : > { %v1816_v34 = vpop.eup %1815  ;;  %1829 = vrcp.f32 %v1200_v27 }
 0x409   : > { %1636 = vmatprep.mubr.bf16.mxu1 %v1237_v26  ;;  %v1226_v39 = vmul.f32 %v1816_v34, %v2299_v51  ;;  %v1818_v40 = vpop.eup %1817 }
 0x40a   : > { %v1202_v35 = vpop.xlane.xlu0 %1201  ;;  %v1227_v44 = vmul.f32 %v1818_v40, %v2297_v49 }
 0x40b   : > { %1831 = vrcp.f32 %v1202_v35  ;;  %v1238_v42 = vpack.c.bf16 %v1226_v39, %v1225_v36 }
 0x40c   : > { %v1820_v43 = vpop.eup %1819 }
 0x40d   : > { %1637 = vmatmul.mubr.bf16.gmra.mxu1 %v1238_v42  ;;  %v1228_v47 = vmul.f32 %v1820_v43, %v2305_v54  ;;  %v1822_v48 = vpop.eup %1821 }
 0x40e   : > { %v1229_v13 = vmul.f32 %v1822_v48, %v2303_v53 }
 0x40f   : > { %v1239_v50 = vpack.c.bf16 %v1228_v47, %v1227_v44 }
 0x410   : > { %v1824_v12 = vpop.eup %1823 }
 0x411   : > { %1640 = vmatprep.mubr.bf16.mxu1 %v1239_v50  ;;  %v1230_v16 = vmul.f32 %v1824_v12, %v2311_v57  ;;  %v1826_v21 = vpop.eup %1825 }
 0x412   : > { %v1231_v30 = vmul.f32 %v1826_v21, %v2309_v55 }
 0x413   : > { %v1240_v22 = vpack.c.bf16 %v1230_v16, %v1229_v13 }
 0x414   : > { %v1828_v25 = vpop.eup %1827 }
 0x415   : > { %v1830_v29 = vpop.eup %1829  ;;  %1641 = vmatmul.mubr.bf16.gmra.mxu1 %v1240_v22  ;;  %v1232_v37 = vmul.f32 %v1828_v25, %v2317_v59 }
 0x416   : > { %v1233_v46 = vmul.f32 %v1830_v29, %v2315_v58 }
 0x417   : > { %v1241_v45 = vpack.c.bf16 %v1232_v37, %v1231_v30 }
 0x418   : > { %v1832_v41 = vpop.eup %1831 }
 0x419   : > { %v1234_v49 = vmul.f32 %v1832_v41, %v2321_v60  ;;  %1644 = vmatprep.mubr.bf16.mxu1 %v1241_v45 }
 0x41b   : > { %v1242_v51 = vpack.c.bf16 %v1234_v49, %v1233_v46 }
 0x41d   : > { %1645 = vmatmul.mubr.bf16.gmra.mxu1 %v1242_v51 }
 0x4c5   : > { %v1634_v52 = vpop.f32.mrf.mxu1 }
 0x4c6   : > { %1350 = vst.msk [vmem:[%s2345_s22 + $0x10] sm:$0xff] %vm661_vm0, %v1634_v52 }
 0x4c7   : > { %v1285_v53 = vpop.f32.mrf.mxu1 }
 0x4c8   : > { %1348 = vst.msk [vmem:[%s2345_s22] sm:$0xff] %vm661_vm0, %v1285_v53 }
 0x4c9   : > { %v1635_v54 = vpop.f32.mrf.mxu1 }
 0x4ca   : > { %1351 = vst.msk [vmem:[%s2345_s22 + $0x18] sm:$0xff] %vm661_vm0, %v1635_v54 }
 0x4cb   : > { %v1288_v55 = vpop.f32.mrf.mxu1 }
 0x4cc   : > { %1349 = vst.msk [vmem:[%s2345_s22 + $0x8] sm:$0xff] %vm661_vm0, %v1288_v55 }
 0x4cd   : > { %v1638_v57 = vpop.f32.mrf.mxu1 }
 0x4ce   : > { %1354 = vst.msk [vmem:[%s2345_s22 + $0x30] sm:$0xff] %vm661_vm0, %v1638_v57 }
 0x4cf   : > { %v1301_v58 = vpop.f32.mrf.mxu1 }
 0x4d0   : > { %1352 = vst.msk [vmem:[%s2345_s22 + $0x20] sm:$0xff] %vm661_vm0, %v1301_v58 }
 0x4d1   : > { %v1639_v59 = vpop.f32.mrf.mxu1 }
 0x4d2   : > { %1355 = vst.msk [vmem:[%s2345_s22 + $0x38] sm:$0xff] %vm661_vm0, %v1639_v59 }
 0x4d3   : > { %v1304_v60 = vpop.f32.mrf.mxu1 }
 0x4d4   : > { %1353 = vst.msk [vmem:[%s2345_s22 + $0x28] sm:$0xff] %vm661_vm0, %v1304_v60 }
 0x4d5   : > { %v1642_v61 = vpop.f32.mrf.mxu1 }
 0x4d6   : > { %1358 = vst.msk [vmem:[%s2345_s22 + $0x50] sm:$0xff] %vm661_vm0, %v1642_v61 }
 0x4d7   : > { %v1317_v33 = vpop.f32.mrf.mxu1 }
 0x4d8   : > { %1356 = vst.msk [vmem:[%s2345_s22 + $0x40] sm:$0xff] %vm661_vm0, %v1317_v33 }
 0x4d9   : > { %v1643_v62 = vpop.f32.mrf.mxu1 }
 0x4da   : > { %1359 = vst.msk [vmem:[%s2345_s22 + $0x58] sm:$0xff] %vm661_vm0, %v1643_v62 }
 0x4db   : > { %v1320_v63 = vpop.f32.mrf.mxu1 }
 0x4dc   : > { %1357 = vst.msk [vmem:[%s2345_s22 + $0x48] sm:$0xff] %vm661_vm0, %v1320_v63 }
 0x4dd   : > { %v1646_v2 = vpop.f32.mrf.mxu1 }
 0x4de   : > { %1362 = vst.msk [vmem:[%s2345_s22 + $0x70] sm:$0xff] %vm661_vm0, %v1646_v2 }
 0x4df   : > { %v1333_v3 = vpop.f32.mrf.mxu1 }
 0x4e0   : > { %1360 = vst.msk [vmem:[%s2345_s22 + $0x60] sm:$0xff] %vm661_vm0, %v1333_v3 }
 0x4e1   : > { %v1647_v4 = vpop.f32.mrf.mxu1 }
 0x4e2   : > { %1363 = vst.msk [vmem:[%s2345_s22 + $0x78] sm:$0xff] %vm661_vm0, %v1647_v4 }
 0x4e3   : > { %v1336_v5 = vpop.f32.mrf.mxu1 }
 0x4e4   : > { %1361 = vst.msk [vmem:[%s2345_s22 + $0x68] sm:$0xff] %vm661_vm0, %v1336_v5 }
 0x4e5 PF: > { %s13_s12 = sadd.s32 1, %s1839_s12  }
 0x4e6   : > { %p10_p4 = scmp.ge.s32.totalorder %s13_s12, 4  }
 0x4e8   :  { %12 = sbr.rel (!%p10_p4) target bundleno = 1 (0x1), region = 62 }

</bundles_post_ra>
